<compile_context>
chip_gen: v5e
topology: v5e:2x2
jax: 0.10.0
libtpu: 0.0.40
codegen_flags: <defaults>
</compile_context>

<pallas_src>
import functools

import jax
import jax.numpy as jnp
from jax.experimental import pallas as pl
from jax.experimental.pallas import tpu as pltpu

SUBLANE = 8


def _round_up(n, m):
    return ((n + m - 1) // m) * m


def _clustering_kernel(x_ref, ct_ref, csq_ref, o_ref, *, inv_alpha, power):
    # x_ref  : [TB, H]   activations (f32)
    # ct_ref : [H, C]    cluster centers, transposed and pre-scaled by -2/alpha
    # csq_ref: [1, C]    sum(mu^2, axis=1) / alpha
    # o_ref  : [TB, C]   soft assignments
    x = x_ref[...]

    # -2/alpha * x . mu^T  on the MXU.
    xc = jnp.dot(x, ct_ref[...], preferred_element_type=jnp.float32)   # [TB, C]

    x_sq = jnp.sum(x * x, axis=-1, keepdims=True)                      # [TB, 1]
    if inv_alpha != 1.0:
        x_sq = x_sq * inv_alpha

    # norm_sq / alpha  (clamped: exact squared distances can't be negative)
    t = jnp.maximum(x_sq + csq_ref[...] + xc, 0.0)                     # [TB, C]

    num = pl.reciprocal(1.0 + t, approx=False)
    if power != 1.0:  # static python float; alpha=1.0 -> power=1.0 -> skipped
        num = num ** power

    denom = jnp.sum(num, axis=-1, keepdims=True)                       # [TB, 1]
    o_ref[...] = (num * pl.reciprocal(denom, approx=False)).astype(o_ref.dtype)


def clustering_forward(x, cluster_centers, alpha=1.0):
    b, hidden = x.shape
    n_clusters, h2 = cluster_centers.shape
    assert h2 == hidden, (cluster_centers.shape, x.shape)

    inv_alpha = 1.0 / float(alpha)
    power = float(alpha + 1) / 2.0

    x = x.astype(jnp.float32)
    mu = cluster_centers.astype(jnp.float32)

    # Hoisted loop-invariants (tiny [H,C] / [1,C] arrays, resident in VMEM).
    ct_scaled = (-2.0 * inv_alpha) * mu.T                         # [H, C]
    csq_scaled = (inv_alpha * jnp.sum(mu * mu, axis=1))[None, :]  # [1, C]

    # Batch tiling: whole (sublane-rounded) batch when small; otherwise big
    # tiles (cap 4096 rows) with at least 2 grid steps so both v7x cores work.
    if b <= 512:
        tb = _round_up(b, SUBLANE)
    else:
        tb = min(4096, _round_up(pl.cdiv(b, 2), SUBLANE))
    grid = pl.cdiv(b, tb)

    out = pl.pallas_call(
        functools.partial(_clustering_kernel, inv_alpha=inv_alpha, power=power),
        out_shape=jax.ShapeDtypeStruct((b, n_clusters), jnp.float32),
        grid=(grid,),
        in_specs=[
            pl.BlockSpec((tb, hidden), lambda i: (i, 0)),            # batch-tiled
            pl.BlockSpec((hidden, n_clusters), lambda i: (0, 0)),    # resident
            pl.BlockSpec((1, n_clusters), lambda i: (0, 0)),         # resident
        ],
        out_specs=pl.BlockSpec((tb, n_clusters), lambda i: (i, 0)),
        compiler_params=pltpu.CompilerParams(
            dimension_semantics=("parallel",),
        ),
    )(x, ct_scaled, csq_scaled)

    return out


clustering_forward_jit = jax.jit(clustering_forward, static_argnames=("alpha",))


def _reference_forward(x, cluster_centers, alpha=1.0):
    # Mirrors the PyTorch forward exactly (broadcasted subtract).
    norm_sq = jnp.sum((x[:, None, :] - cluster_centers[None, :, :]) ** 2, axis=2)
    num = 1.0 / (1.0 + norm_sq / alpha)
    power = float(alpha + 1) / 2.0
    num = num ** power
    return num / jnp.sum(num, axis=1, keepdims=True)


if __name__ == "__main__":
    key = jax.random.PRNGKey(0)
    key, kx, kc = jax.random.split(key, 3)

    batch, hidden, n_clusters, alpha = 8, 10, 10, 1.0
    x = jax.random.normal(kx, (batch, hidden), dtype=jnp.float32)

    # xavier_uniform init for the cluster centers (like the PyTorch module)
    bound = (6.0 / (n_clusters + hidden)) ** 0.5
    cluster_centers = jax.random.uniform(
        kc, (n_clusters, hidden), jnp.float32, -bound, bound
    )

    out = jax.block_until_ready(clustering_forward_jit(x, cluster_centers, alpha=alpha))
    assert out.shape == (batch, n_clusters), out.shape

    ref = _reference_forward(x, cluster_centers, alpha=alpha)
    assert jnp.allclose(out, ref, atol=1e-5, rtol=1e-4), "mismatch vs JAX reference"
    # soft assignments are a valid distribution per row
    assert jnp.allclose(jnp.sum(out, axis=1), 1.0, atol=1e-5)

    print("KERNEL_OK")
</pallas_src>

<mosaic_0001>
module attributes {stable_mosaic.version = 11 : i64} {
  func.func @_clustering_kernel(%arg0: i32, %arg1: memref<8x10xf32, #tpu.memory_space<vmem>>, %arg2: memref<10x10xf32, #tpu.memory_space<vmem>>, %arg3: memref<1x10xf32, #tpu.memory_space<vmem>>, %arg4: memref<8x10xf32, #tpu.memory_space<vmem>>) attributes {dimension_semantics = [#tpu.dimension_semantics<parallel>], iteration_bounds = array<i64: 1>, scalar_prefetch = 0 : i64, scratch_operands = 0 : i64, tpu.core_type = #tpu.core_type<tc>, window_params = [{transform_indices = @transform_0, window_bounds = array<i64: 8, 10>}, {pipeline_mode = #tpu.pipeline_mode<synchronous>, transform_indices = @transform_1, window_bounds = array<i64: 10, 10>}, {pipeline_mode = #tpu.pipeline_mode<synchronous>, transform_indices = @transform_2, window_bounds = array<i64: 1, 10>}, {transform_indices = @transform_3, window_bounds = array<i64: 8, 10>}]} {
    %c0 = arith.constant 0 : index
    %c0_0 = arith.constant 0 : index
    %0 = vector.load %arg1[%c0, %c0_0] : memref<8x10xf32, #tpu.memory_space<vmem>>, vector<8x10xf32>
    %c0_1 = arith.constant 0 : index
    %c0_2 = arith.constant 0 : index
    %1 = vector.load %arg2[%c0_1, %c0_2] : memref<10x10xf32, #tpu.memory_space<vmem>>, vector<10x10xf32>
    %cst = arith.constant dense<0.000000e+00> : vector<8x10xf32>
    %2 = tpu.matmul %0, %1, %cst {dimension_numbers = #tpu.dot_dimension_numbers<[1], [0], [0], [1], [0, 0, 1, 1], [], []>} : vector<8x10xf32>, vector<10x10xf32>, vector<8x10xf32> -> vector<8x10xf32>
    %3 = arith.mulf %0, %0 : vector<8x10xf32>
    %cst_3 = arith.constant dense<0.000000e+00> : vector<8xf32>
    %4 = vector.multi_reduction <add>, %3, %cst_3 [1] : vector<8x10xf32> to vector<8xf32>
    %5 = vector.shape_cast %4 : vector<8xf32> to vector<8x1xf32>
    %c0_4 = arith.constant 0 : index
    %c0_5 = arith.constant 0 : index
    %6 = vector.load %arg3[%c0_4, %c0_5] : memref<1x10xf32, #tpu.memory_space<vmem>>, vector<1x10xf32>
    %7 = vector.broadcast %5 : vector<8x1xf32> to vector<8x10xf32>
    %8 = vector.broadcast %6 : vector<1x10xf32> to vector<8x10xf32>
    %9 = arith.addf %7, %8 : vector<8x10xf32>
    %10 = arith.addf %9, %2 : vector<8x10xf32>
    %cst_6 = arith.constant 0.000000e+00 : f32
    %11 = vector.broadcast %cst_6 : f32 to vector<8x10xf32>
    %12 = arith.maximumf %10, %11 : vector<8x10xf32>
    %cst_7 = arith.constant 1.000000e+00 : f32
    %13 = vector.broadcast %cst_7 : f32 to vector<8x10xf32>
    %14 = arith.addf %13, %12 : vector<8x10xf32>
    %15 = tpu.reciprocal %14 : vector<8x10xf32> -> vector<8x10xf32>
    %cst_8 = arith.constant dense<0.000000e+00> : vector<8xf32>
    %16 = vector.multi_reduction <add>, %15, %cst_8 [1] : vector<8x10xf32> to vector<8xf32>
    %17 = vector.shape_cast %16 : vector<8xf32> to vector<8x1xf32>
    %18 = tpu.reciprocal %17 : vector<8x1xf32> -> vector<8x1xf32>
    %19 = vector.broadcast %18 : vector<8x1xf32> to vector<8x10xf32>
    %20 = arith.mulf %15, %19 : vector<8x10xf32>
    %c0_9 = arith.constant 0 : index
    %c0_10 = arith.constant 0 : index
    %21 = vector.load %arg4[%c0_9, %c0_10] : memref<8x10xf32, #tpu.memory_space<vmem>>, vector<8x10xf32>
    tpu.vector_store %arg4[%c0_9, %c0_10], %20 {strides = array<i32>} : memref<8x10xf32, #tpu.memory_space<vmem>>, vector<8x10xf32>,
    return
  }
  func.func @transform_0(%arg0: i32) -> (i32, i32) {
    %c0_i32 = arith.constant 0 : i32
    %c0_i32_0 = arith.constant 0 : i32
    return %arg0, %c0_i32 : i32, i32
  }
  func.func @transform_1(%arg0: i32) -> (i32, i32) {
    %c0_i32 = arith.constant 0 : i32
    %c0_i32_0 = arith.constant 0 : i32
    %c0_i32_1 = arith.constant 0 : i32
    return %c0_i32, %c0_i32_0 : i32, i32
  }
  func.func @transform_2(%arg0: i32) -> (i32, i32) {
    %c0_i32 = arith.constant 0 : i32
    %c0_i32_0 = arith.constant 0 : i32
    %c0_i32_1 = arith.constant 0 : i32
    return %c0_i32, %c0_i32_0 : i32, i32
  }
  func.func @transform_3(%arg0: i32) -> (i32, i32) {
    %c0_i32 = arith.constant 0 : i32
    %c0_i32_0 = arith.constant 0 : i32
    return %arg0, %c0_i32 : i32, i32
  }
}

</mosaic_0001>

<bundles_post_ra>
// kernel: clustering_forward.1
= control target key start
LH: loop header
LB: loop body
LE: loop exit
PB: predicated region body
PF: predicated region fallthrough
CT: control target
= control target key end

     0   :  { %vm22_vm0 = vcmask 1041408   ;;  %vm18_vm1 = vcmask 80896   ;;  %s181_s0 = inlined_call_operand.vmem [shape: f32[8,10], index: 0, kind: input, shape index: {}]   ;;  %s182_s1 = inlined_call_operand.vmem [shape: f32[10,10], index: 1, kind: input, shape index: {}]   ;;  %s183_s2 = inlined_call_operand.vmem [shape: f32[1,10], index: 2, kind: input, shape index: {}]   ;;  %s184_s3 = inlined_call_operand.hbm [shape: f32[8,10], index: 3, kind: output, shape index: {}]  }
   0x1   :  { %v17_v0 = vld [vmem:[%s182_s1 + $0x8] sm:$0x3]  ;;  %v16_v1 = vld [vmem:[%s182_s1] sm:$0xff] }
   0x2   :  { %v15_v2 = vld [vmem:[%s181_s0] sm:$0xff]  ;;  %107 = vmatpush.msk.msra.mxu0 %vm22_vm0, %v17_v0 }
   0x3   :  { %v46_v3 = vmul.f32 %v15_v2, %v15_v2 }
   0x4   :  { %8 = vsyncpa [#allocation3], 0  ;;  %41 = vmatpush.msra.mxu0 %v16_v1  ;;  %v110_v5 = vld [vmem:[%s183_s2] ss:$0 sm:$0xff]  ;;  %s141_s0 = smov [#allocation2]   ;;  %s98_s21 = sshll.u32 %s184_s3, 4  ;;  %s99_s21 = int_to_ptr.hbm [resolvable:$true] %s98_s21 }
   0x5   :  { %v47_v4 = vsel %vm18_vm1, %v46_v3, 0.0  ;;  %108 = vmatmul.msk.f32.vlgmr.msra.gmra.mxu0 %vm18_vm1, %v15_v2  ;;  %s96_s1 = sshll.u32 %s141_s0, 4  ;;  %s97_s1 = int_to_ptr.vmem [resolvable:$true] %s96_s1 }
   0x6   :  { %48 = vadd.xlane.f32.xlu0 %v47_v4 }
  0x79   :  { %v49_v6 = vpop.xlane.xlu0 %48 }
  0x7a   :  { %v54_v7 = vadd.f32 %v110_v5, %v49_v6 }
  0x82   :  { %v43_v8 = vpop.f32.mrf.mxu0 }
  0x83   :  { %v55_v9 = vadd.f32 %v54_v7, %v43_v8 }
  0x85   :  { %v56_v10 = vmax.f32 %v55_v9, 0.0 }
  0x87   :  { %v57_v11 = vadd.f32 1.0, %v56_v10 }
  0x89   :  { %111 = vrcp.f32 %v57_v11  ;;  %v69_v15 = vand.u32 2147483648, %v57_v11  ;;  %v67_v17 = vand.u32 2147483647, %v57_v11  ;;  %vm63_vm3 = vweird.f32 %v57_v11 }
  0x8b   :  { %v70_v19 = vor.u32 1.1754944e-38, %v69_v15  ;;  %vm68_vm5 = vcmp.eq.f32.partialorder %v67_v17, 8.507059e+37 }
  0x8f   :  { %v112_v12 = vpop.eup %111 }
  0x90   :  { %v59_v13 = vmul.f32 %v112_v12, %v57_v11  ;;  %vm64_vm2 = vweird.f32 %v112_v12 }
  0x91   :  { %vm65_vm4 = vmor %vm63_vm3, %vm64_vm2 }
  0x92   :  { %v60_v14 = vsub.f32 1.0, %v59_v13 }
  0x94   :  { %v61_v16 = vmul.f32 %v112_v12, %v60_v14 }
  0x96   :  { %v62_v18 = vadd.f32 %v112_v12, %v61_v16 }
  0x98   :  { %v66_v20 = vsel %vm65_vm4, %v112_v12, %v62_v18 }
  0x99   :  { %v71_v21 = vsel %vm68_vm5, %v70_v19, %v66_v20 }
  0x9a   :  { %v72_v22 = vsel %vm18_vm1, %v71_v21, 0.0 }
  0x9b   :  { %73 = vadd.xlane.f32.xlu0 %v72_v22 }
 0x10e   :  { %v74_v23 = vpop.xlane.xlu0 %73 }
 0x10f   :  { %113 = vrcp.f32 %v74_v23  ;;  %v86_v27 = vand.u32 2147483648, %v74_v23  ;;  %v84_v29 = vand.u32 2147483647, %v74_v23  ;;  %vm80_vm7 = vweird.f32 %v74_v23 }
 0x111   :  { %v87_v31 = vor.u32 1.1754944e-38, %v86_v27  ;;  %vm85_vm9 = vcmp.eq.f32.partialorder %v84_v29, 8.507059e+37 }
 0x115   :  { %v114_v24 = vpop.eup %113 }
 0x116   :  { %v76_v25 = vmul.f32 %v114_v24, %v74_v23  ;;  %vm81_vm6 = vweird.f32 %v114_v24 }
 0x117   :  { %vm82_vm8 = vmor %vm80_vm7, %vm81_vm6 }
 0x118   :  { %v77_v26 = vsub.f32 1.0, %v76_v25 }
 0x11a   :  { %v78_v28 = vmul.f32 %v114_v24, %v77_v26 }
 0x11c   :  { %v79_v30 = vadd.f32 %v114_v24, %v78_v28 }
 0x11e   :  { %v83_v32 = vsel %vm82_vm8, %v114_v24, %v79_v30 }
 0x11f   :  { %v88_v33 = vsel %vm85_vm9, %v87_v31, %v83_v32 }
 0x120   :  { %v89_v34 = vmul.f32 %v88_v33, %v71_v21 }
 0x122   :  { %90 = vst.msk [vmem:[#allocation2] sm:$0xff] %vm18_vm1, %v89_v34 }
 0x123   :  { %101 = dma.vmem_to_hbm [thread:$0]  %s97_s1, 128, %s99_s21, [#allocation3]  }
 0x124   :  { %139 = dma.done.wait [#allocation3], 128  }
 0x125   :  { %140 = vsyncadd [#allocation3], 4294967168 }
 0x126   :  { %106 = vsyncpa [#allocation3], 1 }

</bundles_post_ra>
